<compile_context>
chip_gen: v7x
topology: tpu7x:2x2x1
jax: 0.10.0
libtpu: 0.0.40
codegen_flags: <defaults>
</compile_context>

<pallas_src>
import math

import jax
import jax.numpy as jnp
from jax.experimental import pallas as pl
from jax.experimental.pallas import tpu as pltpu


def _final_attn_kernel(xf_ref, xl_ref, wq_ref, bq_ref, wkv_ref, bkv_ref,
                       wout_ref, v_out_ref, a_out_ref):
    # Block shapes (static):
    #   xf_ref  : (Bb*T, D)  bf16   flattened x for this batch tile
    #   xl_ref  : (Bb, D)    bf16   last-timestep rows of x
    #   wq_ref  : (D, H)     bf16
    #   bq_ref  : (1, H)     f32
    #   wkv_ref : (D, 2H)    bf16   [W_k | W_v]
    #   bkv_ref : (1, 2H)    f32    [b_k + b_in | b_v]
    #   wout_ref: (1, H)     f32    W_out row (bias dropped: softmax shift-inv.)
    #   v_out_ref: (Bb, H)   f32
    #   a_out_ref: (Bb, T)   f32
    Bb, T = a_out_ref.shape
    H = v_out_ref.shape[1]

    # Fused K|V projection: one big MXU matmul, f32 accumulation.
    kv = jnp.dot(xf_ref[...], wkv_ref[...],
                 preferred_element_type=jnp.float32) + bkv_ref[...]      # (Bb*T, 2H)
    k = kv[:, :H].reshape(Bb, T, H)                                       # b_in already folded in
    v = kv[:, H:].reshape(Bb, T, H)

    # Query from the last timestep only.
    q = jnp.dot(xl_ref[...], wq_ref[...],
                preferred_element_type=jnp.float32) + bq_ref[...]         # (Bb, H)

    # 'add' attention energies.
    h = jnp.tanh(q[:, None, :] + k)                                       # (Bb, T, H) f32
    # e = W_out(h) as a lane reduction (XLU slot, MXU stays free) -> (Bb, T).
    e = jnp.sum(h * wout_ref[...], axis=-1)                               # (Bb, T)

    # Numerically-stable softmax over the time (lane) axis.
    m = jnp.max(e, axis=-1, keepdims=True)
    p = jnp.exp(e - m)
    # approx=False keeps a bit-tight softmax; flip to approx=True (EUP vrcp)
    # if looser tolerances are acceptable.
    a = p * pl.reciprocal(jnp.sum(p, axis=-1, keepdims=True), approx=False)  # (Bb, T)

    # Attention-weighted sum of values: sum_t a[b,t] * v[b,t,:].
    v_out_ref[...] = jnp.sum(a[:, :, None] * v, axis=1)                   # (Bb, H)
    a_out_ref[...] = a                                                    # (Bb, T)


def final_attention_qkv(x, params, *, max_block_b=128):
    """x: (B, T, D) float32. Returns (v: (B, H), a: (B, T))."""
    B, T, D = x.shape
    H = params["wq"].shape[1]

    # --- wrapper-side parameter fusion / layout plumbing (cheap XLA ops) ---
    # Fuse K|V weights, fold b_in into the K bias, drop the W_out bias
    # (softmax shift-invariance makes it a no-op for both outputs).
    wkv = jnp.concatenate([params["wk"], params["wv"]], axis=1).astype(jnp.bfloat16)   # (D, 2H)
    bkv = jnp.concatenate([params["bk"] + params["b_in"][0, 0], params["bv"]], axis=1)  # (1, 2H) f32
    wq = params["wq"].astype(jnp.bfloat16)                                              # (D, H)
    bq = params["bq"]                                                                   # (1, H) f32
    wout_row = params["wout"].T                                                         # (1, H) f32

    # bf16 activations for the MXU (HBM-bound on x); elementwise math stays f32.
    x_bf = x.astype(jnp.bfloat16)
    x_flat = x_bf.reshape(B * T, D)          # free (row-major contiguous)
    x_last = x_bf[:, T - 1, :]               # (B, D)

    # Batch tile: whole batch if it fits, otherwise 128 rows (multiple of 8)
    # per grid step so the batch axis can also shard across TensorCores.
    bb = B if B <= max_block_b else max_block_b
    grid = (pl.cdiv(B, bb),)

    out_v, out_a = pl.pallas_call(
        _final_attn_kernel,
        out_shape=(
            jax.ShapeDtypeStruct((B, H), jnp.float32),
            jax.ShapeDtypeStruct((B, T), jnp.float32),
        ),
        grid_spec=pltpu.PrefetchScalarGridSpec(
            num_scalar_prefetch=0,
            grid=grid,
            in_specs=[
                pl.BlockSpec((bb * T, D), lambda i: (i, 0)),    # x, flattened
                pl.BlockSpec((bb, D), lambda i: (i, 0)),        # x[:, -1, :]
                pl.BlockSpec((D, H), lambda i: (0, 0)),         # W_q
                pl.BlockSpec((1, H), lambda i: (0, 0)),         # b_q
                pl.BlockSpec((D, 2 * H), lambda i: (0, 0)),     # W_k | W_v (fused)
                pl.BlockSpec((1, 2 * H), lambda i: (0, 0)),     # b_k + b_in | b_v
                pl.BlockSpec((1, H), lambda i: (0, 0)),         # W_out row
            ],
            out_specs=[
                pl.BlockSpec((bb, H), lambda i: (i, 0)),        # lane-dense v
                pl.BlockSpec((bb, T), lambda i: (i, 0)),        # lane-dense a
            ],
        ),
        compiler_params=pltpu.CompilerParams(
            dimension_semantics=("parallel",),
            # Safe on all generations (<= default on v6e/v7x, raises v5e's 16 MiB
            # scoped default). Raise further if bb*T*D grows into the MiB range.
            vmem_limit_bytes=32 * 1024 * 1024,
        ),
    )(x_flat, x_last, wq, bq, wkv, bkv, wout_row)
    return out_v, out_a


def init_params(key, attention_input_dim, attention_hidden_dim):
    """Deterministic init mirroring the PyTorch module's shapes/init scheme."""
    D, H = attention_input_dim, attention_hidden_dim
    keys = jax.random.split(key, 8)

    def kaiming_uniform(k, fan_in, shape):
        # kaiming_uniform_ with a=sqrt(5)  =>  bound = 1/sqrt(fan_in)
        bound = 1.0 / math.sqrt(fan_in)
        return jax.random.uniform(k, shape, jnp.float32, -bound, bound)

    # nn.Linear weight is (out, in); we store its transpose (in, out).
    params = {
        "wq": kaiming_uniform(keys[0], D, (D, H)),
        "bq": kaiming_uniform(keys[1], D, (1, H)),
        "wk": kaiming_uniform(keys[2], D, (D, H)),
        "bk": kaiming_uniform(keys[3], D, (1, H)),
        "wv": kaiming_uniform(keys[4], D, (D, H)),
        "bv": kaiming_uniform(keys[5], D, (1, H)),
        "wout": kaiming_uniform(keys[6], H, (H, 1)),
        "bout": kaiming_uniform(keys[7], H, (1, 1)),   # W_out.bias (no-op under softmax)
        "b_in": jnp.zeros((1, 1), jnp.float32),        # self.b_in (zeros at init)
        # Wh / Wa / ba / self.b_out exist in the module but are unused on the
        # 'add' path, so they are not materialized here.
    }
    return params


def _reference(x, p):
    """Pure-JAX reference of the 'add' attention forward.

    Uses the same bf16-inputs / f32-accumulation matmul dtype policy as the
    kernel; includes b_in and the W_out bias explicitly (the kernel folds the
    former and drops the latter via softmax shift-invariance).
    """
    bf = jnp.bfloat16
    xb = x.astype(bf)
    q = jnp.dot(xb[:, -1, :], p["wq"].astype(bf),
                preferred_element_type=jnp.float32) + p["bq"]            # (B, H)
    k = jnp.dot(xb, p["wk"].astype(bf),
                preferred_element_type=jnp.float32) + p["bk"]            # (B, T, H)
    v = jnp.dot(xb, p["wv"].astype(bf),
                preferred_element_type=jnp.float32) + p["bv"]            # (B, T, H)
    h = jnp.tanh(q[:, None, :] + k + p["b_in"][0, 0])
    e = (h @ p["wout"] + p["bout"])[..., 0]                              # (B, T)
    a = jax.nn.softmax(e, axis=1)
    out = jnp.einsum("bt,bth->bh", a, v)
    return out, a


if __name__ == "__main__":
    B, T, D, H = 2, 8, 32, 32
    key = jax.random.PRNGKey(0)
    k_param, k_x, k_bin = jax.random.split(key, 3)

    params = init_params(k_param, D, H)
    # Give b_in a non-trivial value so the wrapper's bias folding is exercised.
    params["b_in"] = 0.1 * jax.random.normal(k_bin, (1, 1), jnp.float32)
    x = jax.random.normal(k_x, (B, T, D), jnp.float32)

    v_out, a_out = final_attention_qkv(x, params)
    jax.block_until_ready((v_out, a_out))

    v_ref, a_ref = _reference(x, params)
    assert v_out.shape == (B, H) and a_out.shape == (B, T)
    assert jnp.allclose(v_out, v_ref, atol=1e-4, rtol=1e-4)
    assert jnp.allclose(a_out, a_ref, atol=1e-4, rtol=1e-4)

    print("KERNEL_OK")
</pallas_src>

<mosaic_0001>
module attributes {stable_mosaic.version = 11 : i64} {
  func.func @_final_attn_kernel(%arg0: i32, %arg1: memref<16x32xbf16, #tpu.memory_space<vmem>>, %arg2: memref<2x32xbf16, #tpu.memory_space<vmem>>, %arg3: memref<32x32xbf16, #tpu.memory_space<vmem>>, %arg4: memref<1x32xf32, #tpu.memory_space<vmem>>, %arg5: memref<32x64xbf16, #tpu.memory_space<vmem>>, %arg6: memref<1x64xf32, #tpu.memory_space<vmem>>, %arg7: memref<1x32xf32, #tpu.memory_space<vmem>>, %arg8: memref<2x32xf32, #tpu.memory_space<vmem>>, %arg9: memref<2x8xf32, #tpu.memory_space<vmem>>) attributes {dimension_semantics = [#tpu.dimension_semantics<parallel>], iteration_bounds = array<i64: 1>, scalar_prefetch = 0 : i64, scratch_operands = 0 : i64, tpu.core_type = #tpu.core_type<tc>, window_params = [{transform_indices = @transform_0, window_bounds = array<i64: 16, 32>}, {transform_indices = @transform_1, window_bounds = array<i64: 2, 32>}, {pipeline_mode = #tpu.pipeline_mode<synchronous>, transform_indices = @transform_2, window_bounds = array<i64: 32, 32>}, {pipeline_mode = #tpu.pipeline_mode<synchronous>, transform_indices = @transform_3, window_bounds = array<i64: 1, 32>}, {pipeline_mode = #tpu.pipeline_mode<synchronous>, transform_indices = @transform_4, window_bounds = array<i64: 32, 64>}, {pipeline_mode = #tpu.pipeline_mode<synchronous>, transform_indices = @transform_5, window_bounds = array<i64: 1, 64>}, {pipeline_mode = #tpu.pipeline_mode<synchronous>, transform_indices = @transform_6, window_bounds = array<i64: 1, 32>}, {transform_indices = @transform_7, window_bounds = array<i64: 2, 32>}, {transform_indices = @transform_8, window_bounds = array<i64: 2, 8>}]} {
    %c0 = arith.constant 0 : index
    %c0_0 = arith.constant 0 : index
    %0 = vector.load %arg1[%c0, %c0_0] : memref<16x32xbf16, #tpu.memory_space<vmem>>, vector<16x32xbf16>
    %c0_1 = arith.constant 0 : index
    %c0_2 = arith.constant 0 : index
    %1 = vector.load %arg5[%c0_1, %c0_2] : memref<32x64xbf16, #tpu.memory_space<vmem>>, vector<32x64xbf16>
    %cst = arith.constant dense<0.000000e+00> : vector<16x64xf32>
    %2 = tpu.matmul %0, %1, %cst {dimension_numbers = #tpu.dot_dimension_numbers<[1], [0], [0], [1], [0, 0, 1, 1], [], []>} : vector<16x32xbf16>, vector<32x64xbf16>, vector<16x64xf32> -> vector<16x64xf32>
    %c0_3 = arith.constant 0 : index
    %c0_4 = arith.constant 0 : index
    %3 = vector.load %arg6[%c0_3, %c0_4] : memref<1x64xf32, #tpu.memory_space<vmem>>, vector<1x64xf32>
    %4 = vector.broadcast %3 : vector<1x64xf32> to vector<16x64xf32>
    %5 = arith.addf %2, %4 : vector<16x64xf32>
    %6 = vector.extract_strided_slice %5 {offsets = [0, 0], sizes = [16, 32], strides = [1, 1]} : vector<16x64xf32> to vector<16x32xf32>
    %7 = vector.shape_cast %6 : vector<16x32xf32> to vector<2x8x32xf32>
    %8 = vector.extract_strided_slice %5 {offsets = [0, 32], sizes = [16, 32], strides = [1, 1]} : vector<16x64xf32> to vector<16x32xf32>
    %9 = vector.shape_cast %8 : vector<16x32xf32> to vector<2x8x32xf32>
    %c0_5 = arith.constant 0 : index
    %c0_6 = arith.constant 0 : index
    %10 = vector.load %arg2[%c0_5, %c0_6] : memref<2x32xbf16, #tpu.memory_space<vmem>>, vector<2x32xbf16>
    %c0_7 = arith.constant 0 : index
    %c0_8 = arith.constant 0 : index
    %11 = vector.load %arg3[%c0_7, %c0_8] : memref<32x32xbf16, #tpu.memory_space<vmem>>, vector<32x32xbf16>
    %cst_9 = arith.constant dense<0.000000e+00> : vector<2x32xf32>
    %12 = tpu.matmul %10, %11, %cst_9 {dimension_numbers = #tpu.dot_dimension_numbers<[1], [0], [0], [1], [0, 0, 1, 1], [], []>} : vector<2x32xbf16>, vector<32x32xbf16>, vector<2x32xf32> -> vector<2x32xf32>
    %c0_10 = arith.constant 0 : index
    %c0_11 = arith.constant 0 : index
    %13 = vector.load %arg4[%c0_10, %c0_11] : memref<1x32xf32, #tpu.memory_space<vmem>>, vector<1x32xf32>
    %14 = vector.broadcast %13 : vector<1x32xf32> to vector<2x32xf32>
    %15 = arith.addf %12, %14 : vector<2x32xf32>
    %16 = vector.shape_cast %15 : vector<2x32xf32> to vector<2x1x32xf32>
    %17 = vector.broadcast %16 : vector<2x1x32xf32> to vector<2x8x32xf32>
    %18 = arith.addf %17, %7 : vector<2x8x32xf32>
    %19 = math.tanh %18 : vector<2x8x32xf32>
    %c0_12 = arith.constant 0 : index
    %c0_13 = arith.constant 0 : index
    %20 = vector.load %arg7[%c0_12, %c0_13] : memref<1x32xf32, #tpu.memory_space<vmem>>, vector<1x32xf32>
    %21 = vector.shape_cast %20 : vector<1x32xf32> to vector<1x1x32xf32>
    %22 = vector.broadcast %21 : vector<1x1x32xf32> to vector<2x8x32xf32>
    %23 = arith.mulf %19, %22 : vector<2x8x32xf32>
    %cst_14 = arith.constant dense<0.000000e+00> : vector<2x8xf32>
    %24 = vector.multi_reduction <add>, %23, %cst_14 [2] : vector<2x8x32xf32> to vector<2x8xf32>
    %cst_15 = arith.constant dense<0xFF800000> : vector<2xf32>
    %25 = vector.multi_reduction <maximumf>, %24, %cst_15 [1] : vector<2x8xf32> to vector<2xf32>
    %26 = vector.shape_cast %25 : vector<2xf32> to vector<2x1xf32>
    %27 = vector.broadcast %26 : vector<2x1xf32> to vector<2x8xf32>
    %28 = arith.subf %24, %27 : vector<2x8xf32>
    %29 = math.exp %28 : vector<2x8xf32>
    %cst_16 = arith.constant dense<0.000000e+00> : vector<2xf32>
    %30 = vector.multi_reduction <add>, %29, %cst_16 [1] : vector<2x8xf32> to vector<2xf32>
    %31 = vector.shape_cast %30 : vector<2xf32> to vector<2x1xf32>
    %32 = tpu.reciprocal %31 : vector<2x1xf32> -> vector<2x1xf32>
    %33 = vector.broadcast %32 : vector<2x1xf32> to vector<2x8xf32>
    %34 = arith.mulf %29, %33 : vector<2x8xf32>
    %35 = vector.shape_cast %34 : vector<2x8xf32> to vector<2x8x1xf32>
    %36 = vector.broadcast %35 : vector<2x8x1xf32> to vector<2x8x32xf32>
    %37 = arith.mulf %36, %9 : vector<2x8x32xf32>
    %cst_17 = arith.constant dense<0.000000e+00> : vector<2x32xf32>
    %38 = vector.multi_reduction <add>, %37, %cst_17 [1] : vector<2x8x32xf32> to vector<2x32xf32>
    %c0_18 = arith.constant 0 : index
    %c0_19 = arith.constant 0 : index
    %39 = vector.load %arg8[%c0_18, %c0_19] : memref<2x32xf32, #tpu.memory_space<vmem>>, vector<2x32xf32>
    tpu.vector_store %arg8[%c0_18, %c0_19], %38 {strides = array<i32>} : memref<2x32xf32, #tpu.memory_space<vmem>>, vector<2x32xf32>,
    %c0_20 = arith.constant 0 : index
    %c0_21 = arith.constant 0 : index
    %40 = vector.load %arg9[%c0_20, %c0_21] : memref<2x8xf32, #tpu.memory_space<vmem>>, vector<2x8xf32>
    tpu.vector_store %arg9[%c0_20, %c0_21], %34 {strides = array<i32>} : memref<2x8xf32, #tpu.memory_space<vmem>>, vector<2x8xf32>,
    return
  }
  func.func @transform_0(%arg0: i32) -> (i32, i32) {
    %c0_i32 = arith.constant 0 : i32
    %c0_i32_0 = arith.constant 0 : i32
    return %arg0, %c0_i32 : i32, i32
  }
  func.func @transform_1(%arg0: i32) -> (i32, i32) {
    %c0_i32 = arith.constant 0 : i32
    %c0_i32_0 = arith.constant 0 : i32
    return %arg0, %c0_i32 : i32, i32
  }
  func.func @transform_2(%arg0: i32) -> (i32, i32) {
    %c0_i32 = arith.constant 0 : i32
    %c0_i32_0 = arith.constant 0 : i32
    %c0_i32_1 = arith.constant 0 : i32
    return %c0_i32, %c0_i32_0 : i32, i32
  }
  func.func @transform_3(%arg0: i32) -> (i32, i32) {
    %c0_i32 = arith.constant 0 : i32
    %c0_i32_0 = arith.constant 0 : i32
    %c0_i32_1 = arith.constant 0 : i32
    return %c0_i32, %c0_i32_0 : i32, i32
  }
  func.func @transform_4(%arg0: i32) -> (i32, i32) {
    %c0_i32 = arith.constant 0 : i32
    %c0_i32_0 = arith.constant 0 : i32
    %c0_i32_1 = arith.constant 0 : i32
    return %c0_i32, %c0_i32_0 : i32, i32
  }
  func.func @transform_5(%arg0: i32) -> (i32, i32) {
    %c0_i32 = arith.constant 0 : i32
    %c0_i32_0 = arith.constant 0 : i32
    %c0_i32_1 = arith.constant 0 : i32
    return %c0_i32, %c0_i32_0 : i32, i32
  }
  func.func @transform_6(%arg0: i32) -> (i32, i32) {
    %c0_i32 = arith.constant 0 : i32
    %c0_i32_0 = arith.constant 0 : i32
    %c0_i32_1 = arith.constant 0 : i32
    return %c0_i32, %c0_i32_0 : i32, i32
  }
  func.func @transform_7(%arg0: i32) -> (i32, i32) {
    %c0_i32 = arith.constant 0 : i32
    %c0_i32_0 = arith.constant 0 : i32
    return %arg0, %c0_i32 : i32, i32
  }
  func.func @transform_8(%arg0: i32) -> (i32, i32) {
    %c0_i32 = arith.constant 0 : i32
    %c0_i32_0 = arith.constant 0 : i32
    return %arg0, %c0_i32 : i32, i32
  }
}

</mosaic_0001>

<bundles_post_ra>
// kernel: tpu_custom_call.1
= control target key start
LH: loop header
LB: loop body
LE: loop exit
PB: predicated region body
PF: predicated region fallthrough
CT: control target
= control target key end

     0   :  { %14 = vsyncpa [#allocation3], 0  ;;  %s768_s0 = inlined_call_operand.hbm [shape: bf16[16,32], index: 0, kind: input, shape index: {}]   ;;  %s769_s1 = inlined_call_operand.vmem [shape: bf16[2,32], index: 1, kind: input, shape index: {}]   ;;  %s770_s2 = inlined_call_operand.hbm [shape: bf16[32,32], index: 2, kind: input, shape index: {}]   ;;  %s771_s3 = inlined_call_operand.vmem [shape: f32[1,32], index: 3, kind: input, shape index: {}]   ;;  %s772_s4 = inlined_call_operand.hbm [shape: bf16[32,64], index: 4, kind: input, shape index: {}]   ;;  %s773_s5 = inlined_call_operand.vmem [shape: f32[1,64], index: 5, kind: input, shape index: {}]   ;;  %s774_s6 = inlined_call_operand.vmem [shape: f32[1,32], index: 6, kind: input, shape index: {}]   ;;  %s775_s7 = inlined_call_operand.hbm [shape: f32[2,32], index: 7, kind: output, shape index: {0}]   ;;  %s776_s8 = inlined_call_operand.hbm [shape: f32[2,8], index: 8, kind: output, shape index: {1}]  }
   0x1   :  { %15 = vsyncpa [#allocation6], 0 }
   0x2   :  { %16 = vsyncpa [#allocation4], 0 }
   0x3   :  { %17 = vsyncpa [#allocation10], 0  ;;  %s592_s27 = smov [#allocation5]   ;;  %s593_s29 = smov [#allocation2]  }
   0x4   :  { %s37_s28 = sshll.u32 %s592_s27, 4  ;;  %s23_s30 = sshll.u32 %s593_s29, 4  ;;  %s38_s28 = int_to_ptr.vmem [resolvable:$true] %s37_s28  ;;  %s649_s30 = int_to_ptr.vmem [resolvable:$true] %s23_s30 }
   0x5   :  { %s474_s11 = scalar_lea.hbm %s770_s2, 256 }
   0x6   :  { %p475_p0 = scmp.ne.s32.totalorder %s770_s2, %s474_s11  ;;  %p478_p1 = scmp.lt.u32.totalorder %s474_s11, %s770_s2 }
   0x8   :  { %p480_p2 = pnand %p478_p1, %p475_p0 }
   0xa   :  { %483 = shalt.err (!%p480_p2)
}
   0xb   :  { %s484_s16 = scalar_lea.vmem %s38_s28, 256  ;;  %p489_p4 = scmp.lt.s32.totalorder %s38_s28, %s38_s28 }
   0xc   :  { %p485_p3 = scmp.ne.s32.totalorder %s38_s28, %s484_s16  ;;  %p490_p5 = scmp.lt.s32.totalorder %s484_s16, %s484_s16 }
   0xe   :  { %p491_p6 = por %p490_p5, %p489_p4 }
  0x10   :  { %p492_p7 = pnand %p491_p6, %p485_p3 }
  0x12   :  { %495 = shalt.err (!%p492_p7)
}
  0x13   :  { %s594_s17 = smov 64   ;;  %s595_s18 = smov 4  }
  0x14   :  { %43 = dma.hbm_to_vmem [thread:$0]  %s770_s2, 256, %s38_s28, [#allocation6], %s594_s17, %s594_s17, %s595_s18  }
  0x15   :  { %s496_s23 = scalar_lea.hbm %s768_s0, 128 }
  0x16   :  { %p497_p8 = scmp.ne.s32.totalorder %s768_s0, %s496_s23  ;;  %p500_p9 = scmp.lt.u32.totalorder %s496_s23, %s768_s0 }
  0x18   :  { %p502_p10 = pnand %p500_p9, %p497_p8 }
  0x1a   :  { %505 = shalt.err (!%p502_p10)
}
  0x1b   :  { %s506_s29 = scalar_lea.vmem %s649_s30, 128  ;;  %p511_p12 = scmp.lt.s32.totalorder %s649_s30, %s649_s30 }
  0x1c   :  { %p507_p11 = scmp.ne.s32.totalorder %s649_s30, %s506_s29  ;;  %p512_p13 = scmp.lt.s32.totalorder %s506_s29, %s506_s29 }
  0x1e   :  { %p513_p0 = por %p512_p13, %p511_p12 }
  0x20   :  { %p514_p1 = pnand %p513_p0, %p507_p11 }
  0x22   :  { %517 = shalt.err (!%p514_p1)
}
  0x23   :  { %29 = dma.hbm_to_vmem [thread:$0]  %s768_s0, 128, %s649_s30, [#allocation3], %s594_s17, %s594_s17, %s595_s18  }
  0x24   :  { %s596_s9 = smov [#allocation7]   ;;  %s518_s13 = scalar_lea.hbm %s772_s4, 256 }
  0x25   :  { %s51_s10 = sshll.u32 %s596_s9, 4  ;;  %p519_p2 = scmp.ne.s32.totalorder %s772_s4, %s518_s13  ;;  %s52_s10 = int_to_ptr.vmem [resolvable:$true] %s51_s10 }
  0x26   :  { %p522_p3 = scmp.lt.u32.totalorder %s518_s13, %s772_s4 }
  0x28   :  { %p524_p4 = pnand %p522_p3, %p519_p2 }
  0x2a   :  { %527 = shalt.err (!%p524_p4)
}
  0x2b   :  { %s528_s20 = scalar_lea.vmem %s52_s10, 256  ;;  %p533_p6 = scmp.lt.s32.totalorder %s52_s10, %s52_s10 }
  0x2c   :  { %p529_p5 = scmp.ne.s32.totalorder %s52_s10, %s528_s20  ;;  %p534_p7 = scmp.lt.s32.totalorder %s528_s20, %s528_s20 }
  0x2e   :  { %p535_p8 = por %p534_p7, %p533_p6 }
  0x30   :  { %p536_p9 = pnand %p535_p8, %p529_p5 }
  0x32   :  { %539 = shalt.err (!%p536_p9)
}
  0x33   :  { %57 = dma.hbm_to_vmem [thread:$0]  %s772_s4, 256, %s52_s10, [#allocation6], %s594_s17, %s594_s17, %s595_s18  }
  0x34   :  { %584 = dma.done.wait [#allocation3], 128  }
  0x35   :  { %585 = vsyncadd [#allocation3], 4294967168 }
  0x36   :  { %586 = dma.done.wait [#allocation6], 512  }
  0x37   :  { %587 = vsyncadd [#allocation6], 4294966784  ;;  %v597_v0 = vmov 0.0   ;;  %vm598_vm0 = vmmov 0   ;;  %v459_v1 = vld [vmem:[#allocation5] sm:$0xff]   ;;  %v460_v2 = vld [vmem:[#allocation7] sm:$0xff]   ;;  %v218_v9 = vlaneseq }
  0x38   :  { %437 = vmatprep.subr.bf16.mxu1 %v597_v0  ;;  %429 = vmatprep.subr.bf16.mxu0 %v597_v0  ;;  %v461_v3 = vld [vmem:[#allocation5 + $0x8] sm:$0xff]   ;;  %v462_v4 = vld [vmem:[#allocation7 + $0x8] sm:$0xff]   ;;  %vm102_vm1 = vcmask 261120   ;;  %v599_v7 = vmov 1966171168   ;;  %vm278_vm2 = vcmask 1041409  }
  0x39   :  { %441 = vmatprep.mubr.msk.bf16.mxu1 %vm598_vm0, %v597_v0  ;;  %433 = vmatprep.mubr.msk.bf16.mxu0 %vm598_vm0, %v597_v0  ;;  %v147_v5 = vld [vmem:[%s769_s1] sm:$0x1]  ;;  %v216_v8 = vunpack.c.l.s4 %v599_v7  ;;  %v706_v11 = vshrl.u32 %v218_v9, 7  ;;  %v269_v42 = vand.u32 127, %v218_v9  ;;  %vm281_vm3 = vcmask 58368  }
  0x3a   :  { %438 = vmatpush3.bf16.msra.mxu1 %v459_v1  ;;  %430 = vmatpush3.bf16.msra.mxu0 %v460_v2  ;;  %v463_v6 = vld [vmem:[#allocation2] sm:$0xff]   ;;  %v600_v50 = vmov 0   ;;  %vm349_vm4 = vcmask 523520  }
  0x3b   :  { %439 = vmatprep.subr.bf16.mxu1 %v597_v0  ;;  %431 = vmatprep.subr.bf16.mxu0 %v597_v0  ;;  %v217_v10 = vunpack.c.0.s8 %v216_v8  ;;  %v418_v12 = vld [vmem:[%s771_s3] ss:$0 sm:$0xff]  ;;  %v716_v22 = vsub.s32 0, %v706_v11  ;;  %v272_v44 = vsub.s32 %v269_v42, %v706_v11  ;;  %v292_v51 = vsub.s32 1, %v706_v11 }
  0x3c   :  { %v413_v19 = vld [vmem:[%s773_s5] ss:$0 sm:$0xff]  ;;  %458 = vset.pattern.permute.xlu0 %v600_v50  ;;  %457 = vset.pattern.permute.xlu1 %v600_v50 }
  0x3d   :  { %v220_v13 = vsub.s32 %v217_v10, %v706_v11  ;;  %v422_v35 = vld [vmem:[%s774_s6] ss:$0 sm:$0xff]  ;;  %s601_s6 = smov [#allocation9]  }
  0x3e   :  { %440 = vmatpush3.bf16.msra.mxu1 %v461_v3  ;;  %432 = vmatpush3.bf16.msra.mxu0 %v462_v4  ;;  %s399_s23 = sshll.u32 %s601_s6, 4  ;;  %s400_s23 = int_to_ptr.vmem [resolvable:$true] %s399_s23 }
  0x3f   :  { %s540_s24 = scalar_lea.vmem %s400_s23, 32  ;;  %p545_p11 = scmp.lt.s32.totalorder %s400_s23, %s400_s23 }
  0x40   :  { %p541_p10 = scmp.ne.s32.totalorder %s400_s23, %s540_s24  ;;  %p546_p12 = scmp.lt.s32.totalorder %s540_s24, %s540_s24 }
  0x41   :  { %442 = vmatmul.mubr.msk.bf16.vlgmr.msra.gmra.mrb[0].mxu1 %vm102_vm1, %v147_v5  ;;  %434 = vmatmul.mubr.msk.bf16.vlgmr.msra.gmra.mrb[0].mxu0 %vm102_vm1, %v463_v6 }
  0x42   :  { %p547_p13 = por %p546_p12, %p545_p11 }
  0x44   :  { %p548_p0 = pnand %p547_p13, %p541_p10 }
 0x114   :  { %v208_v14 = vpop.f32.mrb[0].mxu1  ;;  %v140_v17 = vpop.f32.mrb[0].mxu0 }
 0x115   :  { %v209_v15 = vadd.f32 %v418_v12, %v208_v14  ;;  %v443_v16 = vpop.f32.mrb[1].mxu1  ;;  %v435_v20 = vpop.f32.mrb[1].mxu0  ;;  %v718_v28 = vadd.f32 %v413_v19, %v140_v17 }
 0x116   :  { %v211_v18 = vpop.f32.mrb[2].mxu1  ;;  %v143_v24 = vpop.f32.mrb[2].mxu0 }
 0x117   :  { %v221_v21 = vrot.slane %v209_v15, %v220_v13  ;;  %v444_v23 = vpop.f32.mrb[3].mxu1  ;;  %v436_v25 = vpop.f32.mrb[3].mxu0  ;;  %v722_v32 = vadd.f32 %v413_v19, %v143_v24 }
 0x119   :  { %v222_v26 = vcombine.high %v221_v21, %v221_v21  ;;  %v229_v27 = vrot.slane %v221_v21, %v220_v13 }
 0x11b   :  { %v240_v29 = vrot.slane %v229_v27, %v716_v22  ;;  %v236_v30 = vrot.slane %v222_v26, %v220_v13 }
 0x11d   :  { %v247_v31 = vadd.f32 %v240_v29, %v718_v28  ;;  %v244_v33 = vrot.slane %v236_v30, %v716_v22 }
 0x11f   :  { %464 = vtanh.f32 %v247_v31  ;;  %v248_v34 = vadd.f32 %v244_v33, %v722_v32 }
 0x121   :  { %466 = vtanh.f32 %v248_v34 }
 0x129   :  { %v465_v36 = vpop.eup %464 }
 0x12a   :  { %v258_v37 = vmul.f32 %v465_v36, %v422_v35 }
 0x12b   :  { %v467_v38 = vpop.eup %466 }
 0x12c   :  { %v260_v39 = vsel %vm102_vm1, %v258_v37, 0.0  ;;  %v259_v40 = vmul.f32 %v467_v38, %v422_v35 }
 0x12d   :  { %261 = vadd.xlane.f32.xlu0 %v260_v39 }
 0x12e   :  { %v263_v41 = vsel %vm102_vm1, %v259_v40, 0.0 }
 0x131   :  { %264 = vadd.xlane.f32.xlu0 %v263_v41 }
 0x1ba   :  { %v262_v43 = vpop.xlane.xlu0 %261 }
 0x1bb   :  { %v273_v46 = vrot.slane %v262_v43, %v272_v44 }
 0x1be   :  { %v265_v45 = vpop.xlane.xlu0 %264 }
 0x1bf   :  { %v277_v47 = vrot.slane %v265_v45, %v272_v44 }
 0x1c1   :  { %v279_v48 = vsel %vm278_vm2, %v277_v47, %v273_v46 }
 0x1c2   :  { %v282_v49 = vsel %vm281_vm3, %v279_v48, -inf }
 0x1c3   :  { %283 = vmax.xlane.f32.xlu1 %v282_v49 }
 0x250   :  { %v284_v52 = vpop.xlane.xlu1 %283 }
 0x251   :  { %v289_v53 = vrot.slane %v284_v52, %v716_v22  ;;  %v293_v54 = vrot.slane %v284_v52, %v292_v51 }
 0x253   :  { %v296_v55 = vsub.f32 %v262_v43, %v289_v53  ;;  %v297_v56 = vsub.f32 %v265_v45, %v293_v54 }
 0x255   :  { %v298_v57 = vmul.f32 1.442695, %v296_v55  ;;  %v300_v58 = vmul.f32 1.442695, %v297_v56 }
 0x257   :  { %468 = vpow2.f32 %v298_v57 }
 0x258   :  { %470 = vpow2.f32 %v300_v58 }
 0x261   :  { %v469_v59 = vpop.eup %468 }
 0x262   :  { %v471_v60 = vpop.eup %470  ;;  %305 = vperm.xlu1 %457, %v469_v59  }
 0x263   :  { %308 = vperm.xlu0 %458, %v471_v60  }
 0x2e1   :  { %v306_v61 = vpop.permute.xlu1 %305 }
 0x2e2   :  { %v309_v62 = vpop.permute.xlu0 %308  ;;  %v313_v63 = vrot.slane %v306_v61, %v272_v44 }
 0x2e3   :  { %v317_v0 = vrot.slane %v309_v62, %v272_v44 }
 0x2e5   :  { %v318_v1 = vsel %vm278_vm2, %v317_v0, %v313_v63 }
 0x2e6   :  { %v320_v2 = vsel %vm281_vm3, %v318_v1, 0.0 }
 0x2e7   :  { %321 = vadd.xlane.f32.xlu1 %v320_v2 }
 0x374   :  { %v322_v3 = vpop.xlane.xlu1 %321 }
 0x375   :  { %472 = vrcp.f32 %v322_v3 }
 0x37f   :  { %v473_v4 = vpop.eup %472 }
 0x380   :  { %v328_v5 = vrot.slane %v473_v4, %v716_v22  ;;  %v332_v7 = vrot.slane %v473_v4, %v292_v51 }
 0x382   :  { %v335_v6 = vmul.f32 %v469_v59, %v328_v5  ;;  %v336_v8 = vmul.f32 %v471_v60, %v332_v7 }
 0x384   :  { %339 = vperm.xlu0 %458, %v335_v6  }
 0x388   :  { %344 = vperm.xlu0 %458, %v336_v8  }
 0x403   :  { %v340_v9 = vpop.permute.xlu0 %339 }
 0x404   :  { %v347_v10 = vmul.f32 %v340_v9, %v718_v28  ;;  %v375_v14 = vrot.slane %v340_v9, %v272_v44 }
 0x406   :  { %v350_v11 = vsel %vm349_vm4, %v347_v10, 0.0 }
 0x407   :  { %v351_v12 = vrot.slane %v350_v11, 4  ;;  %v345_v13 = vpop.permute.xlu0 %344 }
 0x408   :  { %v348_v15 = vmul.f32 %v345_v13, %v722_v32  ;;  %v379_v16 = vrot.slane %v345_v13, %v272_v44 }
 0x409   :  { %v352_v17 = vadd.f32 %v351_v12, %v350_v11 }
 0x40a   :  { %v357_v18 = vsel %vm349_vm4, %v348_v15, 0.0  ;;  %v380_v19 = vsel %vm278_vm2, %v379_v16, %v375_v14 }
 0x40b   :  { %v353_v20 = vrot.slane %v352_v17, 2  ;;  %v358_v21 = vrot.slane %v357_v18, 4  ;;  %382 = vst.msk [vmem:[#allocation9] sm:$0x3] %vm281_vm3, %v380_v19 }
 0x40c   :  { %551 = shalt.err (!%p548_p0)
}
 0x40d   :  { %s552_s27 = scalar_lea.hbm %s776_s8, 32 }
 0x40e   :  { %p553_p1 = scmp.ne.s32.totalorder %s776_s8, %s552_s27  ;;  %p556_p2 = scmp.lt.u32.totalorder %s552_s27, %s776_s8 }
 0x410   :  { %p558_p3 = pnand %p556_p2, %p553_p1 }
 0x412   :  { %561 = shalt.err (!%p558_p3)
}
 0x413   :  { %402 = dma.vmem_to_hbm [thread:$0]  %s400_s23, 32, %s776_s8, [#allocation10]   ;;  %v354_v22 = vadd.f32 %v353_v20, %v352_v17  ;;  %v359_v23 = vadd.f32 %v358_v21, %v357_v18  ;;  %vm370_vm5 = vcmask 254976  }
 0x414   :  { %s602_s12 = smov 96   ;;  %s603_s13 = smov [#allocation8]  }
 0x415   :  { %v360_v24 = vrot.slane %v359_v23, 2  ;;  %v355_v26 = vrot.slane %v354_v22, 1  ;;  %s389_s14 = sshll.u32 %s603_s13, 4  ;;  %s390_s14 = int_to_ptr.vmem [resolvable:$true] %s389_s14 }
 0x416   :  { %s562_s15 = scalar_lea.vmem %s390_s14, 32  ;;  %p567_p5 = scmp.lt.s32.totalorder %s390_s14, %s390_s14 }
 0x417   :  { %v361_v25 = vadd.f32 %v360_v24, %v359_v23  ;;  %v356_v28 = vadd.f32 %v355_v26, %v354_v22  ;;  %p563_p4 = scmp.ne.s32.totalorder %s390_s14, %s562_s15  ;;  %p568_p6 = scmp.lt.s32.totalorder %s562_s15, %s562_s15 }
 0x419   :  { %v362_v27 = vrot.slane %v361_v25, 1  ;;  %p569_p7 = por %p568_p6, %p567_p5 }
 0x41b   :  { %v363_v29 = vadd.f32 %v362_v27, %v361_v25  ;;  %p570_p8 = pnand %p569_p7, %p563_p4 }
 0x41d   :  { %v366_v30 = vsel %vm278_vm2, %v363_v29, %v356_v28 }
 0x41e   :  { %367 = vrot.lane.b32.xlu1 %v366_v30, %s602_s12 }
 0x490   :  { %v368_v31 = vpop.permute.xlu1 %367 }
 0x491   :  { %371 = vst.msk [vmem:[#allocation8] sm:$0x3] %vm370_vm5, %v368_v31 }
 0x492   :  { %573 = shalt.err (!%p570_p8)
}
 0x493   :  { %s574_s19 = scalar_lea.hbm %s775_s7, 32 }
 0x494   :  { %p575_p9 = scmp.ne.s32.totalorder %s775_s7, %s574_s19  ;;  %p578_p10 = scmp.lt.u32.totalorder %s574_s19, %s775_s7 }
 0x496   :  { %p580_p11 = pnand %p578_p10, %p575_p9 }
 0x498   :  { %583 = shalt.err (!%p580_p11)
}
 0x499   :  { %392 = dma.vmem_to_hbm [thread:$0]  %s390_s14, 32, %s775_s7, [#allocation4]  }
 0x49a   :  { %588 = dma.done.wait [#allocation4], 32  }
 0x49b   :  { %589 = vsyncadd [#allocation4], 4294967264 }
 0x49c   :  { %590 = dma.done.wait [#allocation10], 32  }
 0x49d   :  { %591 = vsyncadd [#allocation10], 4294967264 }
 0x49e   :  { %409 = vsyncpa [#allocation3], 1 }
 0x49f   :  { %410 = vsyncpa [#allocation6], 1 }
 0x4a0   :  { %411 = vsyncpa [#allocation4], 1 }
 0x4a1   :  { %412 = vsyncpa [#allocation10], 1 }

</bundles_post_ra>
